<compile_context>
chip_gen: v6e
topology: v6e:2x2x1
jax: 0.10.0
libtpu: 0.0.40
codegen_flags: <defaults>
</compile_context>

<pallas_src>
import functools
import math

import jax
import jax.numpy as jnp
from jax.experimental import pallas as pl
from jax.experimental.pallas import tpu as pltpu

_EPS = 1e-06
_LOG_HALF = math.log(0.5)


def _round_up(x, m):
    return ((x + m - 1) // m) * m


def _ranking_loss_kernel(yp_ref, y_ref, m_ref, out_ref, *, exp):
    """Processes one (B, tt) time tile.

    out_ref is an output-resident accumulator of shape (1, 4, B, tt) holding
    per-(batch-row, time-lane) partial sums of:
      [0] sum_i (log_sigmoid(d_yp[i,j,t]) * calc_msk[i,j,t]) ** exp
      [1] sum_i calc_msk[i,j,t]
      [2] y_pred[j,t] ** 2
      [3] msk[j,t]
    The expensive cross-lane/cross-sublane reduction and the final scalar
    arithmetic run once, outside the kernel.
    """
    k = pl.program_id(1)   # inner (reduction) axis over time tiles

    yp = yp_ref[...].astype(jnp.float32)     # (B, tt)
    y = y_ref[...].astype(jnp.float32)       # (B, tt)
    m = m_ref[...].astype(jnp.float32)       # (B, tt)

    # pairwise over the batch axis, per time step:
    #   d[i, j, t] = x[j, t] - x[i, t]
    # == torch's (x.T).unsqueeze(1) - (x.T).unsqueeze(2) at [t, i, j].
    d_yp = yp[None, :, :] - yp[:, None, :]   # (B, B, tt)
    d_y = y[None, :, :] - y[:, None, :]      # (B, B, tt)
    mm = m[None, :, :] * m[:, None, :]       # (B, B, tt)
    calc_msk = jnp.where(d_y > 0.0, mm, 0.0)

    # stable fused log-sigmoid (2 EUP ops, never -inf):
    #   log(sigmoid(x)) = min(x, 0) - log1p(exp(-|x|))
    log_sig = jnp.minimum(d_yp, 0.0) - jnp.log1p(jnp.exp(-jnp.abs(d_yp)))

    base = log_sig * calc_msk                # constant /log(0.5) hoisted out
    term = base ** exp                       # static small int -> multiplies

    # cheap leading-axis (VPU) partial reductions; no XLU work per step
    num_p = jnp.sum(term, axis=0)            # (B, tt)
    cnt_p = jnp.sum(calc_msk, axis=0)        # (B, tt)

    upd = jnp.stack([num_p, cnt_p, yp * yp, m], axis=0)[None]   # (1,4,B,tt)

    @pl.when(k == 0)
    def _():
        out_ref[...] = jnp.zeros_like(out_ref)

    out_ref[...] += upd


def masked_pairwise_ranking_loss(y_pred, y, msk, *, wd=0.1, exp=2,
                                 max_time_tile=2048,
                                 vmem_budget_bytes=16 * 1024 * 1024):
    """y_pred, y, msk: (batch, time) arrays. Returns a scalar f32 loss."""
    B, T = y_pred.shape
    if isinstance(exp, float) and float(exp).is_integer():
        exp = int(exp)   # keep the power an integer -> multiplies, no EUP/NaN

    # --- choose a large, lane-aligned time tile bounded by a VMEM budget ---
    # live bytes per time column ~ pairwise f32 temporaries (≈6·B²·4)
    #                            + double-buffered inputs (2·3·B·4)
    #                            + the (4, B) accumulator block.
    per_col = 24 * B * B + 64 * B
    cap = max(128, (vmem_budget_bytes // per_col) // 128 * 128)
    tt = int(min(max_time_tile, cap, _round_up(T, 128)))

    n_blocks = -(-T // tt)                   # ceil
    num_par = 2 if n_blocks >= 2 else 1      # 2-way split -> both TCs on v7x
    n_inner = -(-n_blocks // num_par)
    t_pad = num_par * n_inner * tt
    if t_pad != T:
        pad = ((0, 0), (0, t_pad - T))
        # zero mask (and zero y_pred) => padded columns contribute exactly 0
        y_pred = jnp.pad(y_pred, pad)
        y = jnp.pad(y, pad)
        msk = jnp.pad(msk, pad)

    kern = functools.partial(_ranking_loss_kernel, exp=exp)
    in_map = lambda p, k: (0, p * n_inner + k)

    parts = pl.pallas_call(
        kern,
        out_shape=jax.ShapeDtypeStruct((num_par, 4, B, tt), jnp.float32),
        grid_spec=pltpu.PrefetchScalarGridSpec(
            num_scalar_prefetch=0,
            grid=(num_par, n_inner),
            in_specs=[
                pl.BlockSpec((B, tt), in_map),   # y_pred
                pl.BlockSpec((B, tt), in_map),   # y
                pl.BlockSpec((B, tt), in_map),   # msk
            ],
            out_specs=pl.BlockSpec((1, 4, B, tt), lambda p, k: (p, 0, 0, 0)),
        ),
        compiler_params=pltpu.CompilerParams(
            dimension_semantics=("parallel", "arbitrary"),
            vmem_limit_bytes=32 * 1024 * 1024),
    )(y_pred, y, msk)

    # tiny final reduction + scalar math in plain JAX (negligible cost)
    sums = jnp.sum(parts, axis=(0, 2, 3))    # (4,)
    num, cnt, sq, msum = sums[0], sums[1], sums[2], sums[3]

    scale = (1.0 / _LOG_HALF) ** exp         # hoisted constant scaling
    loss = num * scale / (cnt + _EPS)
    if wd != 0:                              # wd is a static hyperparameter
        loss = loss + sq / (msum + _EPS) * wd
    return loss


def _reference(y_pred, y, msk, *, wd=0.1, exp=2):
    """Pure-JAX mirror of the PyTorch forward (for verification)."""
    yp, yy, mm = y_pred.T, y.T, msk.T                       # (T, B)
    exd_yp = yp[:, None, :] - yp[:, :, None]                # (T, B, B)
    exd_y = yy[:, None, :] - yy[:, :, None]
    exd_m = mm[:, None, :] * mm[:, :, None]
    calc_msk = (exd_y > 0).astype(jnp.float32) * exd_m
    loss = ((jnp.log(jax.nn.sigmoid(exd_yp)) * calc_msk / _LOG_HALF) ** exp).sum()
    loss = loss / (calc_msk.sum() + _EPS)
    if wd != 0:
        loss = loss + (yp ** 2).sum() / (mm.sum() + _EPS) * wd
    return loss


if __name__ == "__main__":
    key = jax.random.PRNGKey(0)
    k1, k2, k3 = jax.random.split(key, 3)

    B, T = 8, 256  # (batch_size, time_step)
    y_pred = jax.random.normal(k1, (B, T), dtype=jnp.float32)
    y = jax.random.normal(k2, (B, T), dtype=jnp.float32)
    msk = (jax.random.uniform(k3, (B, T)) > 0.3).astype(jnp.float32)

    loss = masked_pairwise_ranking_loss(y_pred, y, msk, wd=0.1, exp=2)
    loss = jax.block_until_ready(loss)

    ref = jax.block_until_ready(_reference(y_pred, y, msk, wd=0.1, exp=2))
    assert jnp.allclose(loss, ref, rtol=1e-4, atol=1e-5), (loss, ref)

    print("KERNEL_OK")
</pallas_src>

<mosaic_0001>
module attributes {stable_mosaic.version = 11 : i64} {
  func.func @_ranking_loss_kernel(%arg0: i32, %arg1: i32, %arg2: memref<8x256xf32, #tpu.memory_space<vmem>>, %arg3: memref<8x256xf32, #tpu.memory_space<vmem>>, %arg4: memref<8x256xf32, #tpu.memory_space<vmem>>, %arg5: memref<1x4x8x256xf32, #tpu.memory_space<vmem>>) attributes {dimension_semantics = [#tpu.dimension_semantics<parallel>, #tpu.dimension_semantics<arbitrary>], iteration_bounds = array<i64: 1, 1>, scalar_prefetch = 0 : i64, scratch_operands = 0 : i64, tpu.core_type = #tpu.core_type<tc>, window_params = [{transform_indices = @transform_0, window_bounds = array<i64: 8, 256>}, {transform_indices = @transform_1, window_bounds = array<i64: 8, 256>}, {transform_indices = @transform_2, window_bounds = array<i64: 8, 256>}, {transform_indices = @transform_3, window_bounds = array<i64: 1, 4, 8, 256>}]} {
    %c0 = arith.constant 0 : index
    %c0_0 = arith.constant 0 : index
    %0 = vector.load %arg2[%c0, %c0_0] : memref<8x256xf32, #tpu.memory_space<vmem>>, vector<8x256xf32>
    %c0_1 = arith.constant 0 : index
    %c0_2 = arith.constant 0 : index
    %1 = vector.load %arg3[%c0_1, %c0_2] : memref<8x256xf32, #tpu.memory_space<vmem>>, vector<8x256xf32>
    %c0_3 = arith.constant 0 : index
    %c0_4 = arith.constant 0 : index
    %2 = vector.load %arg4[%c0_3, %c0_4] : memref<8x256xf32, #tpu.memory_space<vmem>>, vector<8x256xf32>
    %3 = vector.shape_cast %0 : vector<8x256xf32> to vector<1x8x256xf32>
    %4 = vector.shape_cast %0 : vector<8x256xf32> to vector<8x1x256xf32>
    %5 = vector.broadcast %3 : vector<1x8x256xf32> to vector<8x8x256xf32>
    %6 = vector.broadcast %4 : vector<8x1x256xf32> to vector<8x8x256xf32>
    %7 = arith.subf %5, %6 : vector<8x8x256xf32>
    %8 = vector.shape_cast %1 : vector<8x256xf32> to vector<1x8x256xf32>
    %9 = vector.shape_cast %1 : vector<8x256xf32> to vector<8x1x256xf32>
    %10 = vector.broadcast %8 : vector<1x8x256xf32> to vector<8x8x256xf32>
    %11 = vector.broadcast %9 : vector<8x1x256xf32> to vector<8x8x256xf32>
    %12 = arith.subf %10, %11 : vector<8x8x256xf32>
    %13 = vector.shape_cast %2 : vector<8x256xf32> to vector<1x8x256xf32>
    %14 = vector.shape_cast %2 : vector<8x256xf32> to vector<8x1x256xf32>
    %15 = vector.broadcast %13 : vector<1x8x256xf32> to vector<8x8x256xf32>
    %16 = vector.broadcast %14 : vector<8x1x256xf32> to vector<8x8x256xf32>
    %17 = arith.mulf %15, %16 : vector<8x8x256xf32>
    %cst = arith.constant 0.000000e+00 : f32
    %18 = vector.broadcast %cst : f32 to vector<8x8x256xf32>
    %19 = arith.cmpf ogt, %12, %18 : vector<8x8x256xf32>
    %cst_5 = arith.constant 0.000000e+00 : f32
    %20 = vector.broadcast %cst_5 : f32 to vector<8x8x256xf32>
    %21 = arith.select %19, %17, %20 : vector<8x8x256xi1>, vector<8x8x256xf32>
    %cst_6 = arith.constant 0.000000e+00 : f32
    %22 = vector.broadcast %cst_6 : f32 to vector<8x8x256xf32>
    %23 = arith.minimumf %7, %22 : vector<8x8x256xf32>
    %24 = math.absf %7 : vector<8x8x256xf32>
    %cst_7 = arith.constant 0.000000e+00 : f32
    %25 = vector.broadcast %cst_7 : f32 to vector<8x8x256xf32>
    %26 = arith.subf %25, %24 : vector<8x8x256xf32>
    %27 = math.exp %26 : vector<8x8x256xf32>
    %28 = math.log1p %27 : vector<8x8x256xf32>
    %29 = arith.subf %23, %28 : vector<8x8x256xf32>
    %30 = arith.mulf %29, %21 : vector<8x8x256xf32>
    %31 = arith.mulf %30, %30 : vector<8x8x256xf32>
    %cst_8 = arith.constant dense<0.000000e+00> : vector<8x256xf32>
    %32 = vector.multi_reduction <add>, %31, %cst_8 [0] : vector<8x8x256xf32> to vector<8x256xf32>
    %cst_9 = arith.constant dense<0.000000e+00> : vector<8x256xf32>
    %33 = vector.multi_reduction <add>, %21, %cst_9 [0] : vector<8x8x256xf32> to vector<8x256xf32>
    %34 = arith.mulf %0, %0 : vector<8x256xf32>
    %35 = vector.shape_cast %32 : vector<8x256xf32> to vector<1x8x256xf32>
    %36 = vector.shape_cast %33 : vector<8x256xf32> to vector<1x8x256xf32>
    %37 = vector.shape_cast %34 : vector<8x256xf32> to vector<1x8x256xf32>
    %38 = vector.shape_cast %2 : vector<8x256xf32> to vector<1x8x256xf32>
    %39 = tpu.concatenate %35, %36, %37, %38 in 0 : vector<1x8x256xf32>, vector<1x8x256xf32>, vector<1x8x256xf32>, vector<1x8x256xf32> -> vector<4x8x256xf32>
    %40 = vector.shape_cast %39 : vector<4x8x256xf32> to vector<1x4x8x256xf32>
    %c0_i32 = arith.constant 0 : i32
    %41 = arith.cmpi eq, %arg1, %c0_i32 : i32
    %42 = arith.extui %41 : i1 to i32
    %c0_i32_10 = arith.constant 0 : i32
    %43 = arith.cmpi ne, %42, %c0_i32_10 : i32
    scf.if %43 {
      %cst_19 = arith.constant 0.000000e+00 : f32
      %47 = vector.broadcast %cst_19 : f32 to vector<1x4x8x256xf32>
      %c0_20 = arith.constant 0 : index
      %c0_21 = arith.constant 0 : index
      %c0_22 = arith.constant 0 : index
      %c0_23 = arith.constant 0 : index
      %48 = vector.load %arg5[%c0_20, %c0_21, %c0_22, %c0_23] : memref<1x4x8x256xf32, #tpu.memory_space<vmem>>, vector<1x4x8x256xf32>
      tpu.vector_store %arg5[%c0_20, %c0_21, %c0_22, %c0_23], %47 {strides = array<i32>} : memref<1x4x8x256xf32, #tpu.memory_space<vmem>>, vector<1x4x8x256xf32>,
    } else {
    }
    %c0_11 = arith.constant 0 : index
    %c0_12 = arith.constant 0 : index
    %c0_13 = arith.constant 0 : index
    %c0_14 = arith.constant 0 : index
    %44 = vector.load %arg5[%c0_11, %c0_12, %c0_13, %c0_14] : memref<1x4x8x256xf32, #tpu.memory_space<vmem>>, vector<1x4x8x256xf32>
    %45 = arith.addf %44, %40 : vector<1x4x8x256xf32>
    %c0_15 = arith.constant 0 : index
    %c0_16 = arith.constant 0 : index
    %c0_17 = arith.constant 0 : index
    %c0_18 = arith.constant 0 : index
    %46 = vector.load %arg5[%c0_15, %c0_16, %c0_17, %c0_18] : memref<1x4x8x256xf32, #tpu.memory_space<vmem>>, vector<1x4x8x256xf32>
    tpu.vector_store %arg5[%c0_15, %c0_16, %c0_17, %c0_18], %45 {strides = array<i32>} : memref<1x4x8x256xf32, #tpu.memory_space<vmem>>, vector<1x4x8x256xf32>,
    return
  }
  func.func @transform_0(%arg0: i32, %arg1: i32) -> (i32, i32) {
    %c1_i32 = arith.constant 1 : i32
    %0 = arith.muli %arg0, %c1_i32 : i32
    %1 = arith.addi %0, %arg1 : i32
    %c0_i32 = arith.constant 0 : i32
    %c0_i32_0 = arith.constant 0 : i32
    return %c0_i32, %1 : i32, i32
  }
  func.func @transform_1(%arg0: i32, %arg1: i32) -> (i32, i32) {
    %c1_i32 = arith.constant 1 : i32
    %0 = arith.muli %arg0, %c1_i32 : i32
    %1 = arith.addi %0, %arg1 : i32
    %c0_i32 = arith.constant 0 : i32
    %c0_i32_0 = arith.constant 0 : i32
    return %c0_i32, %1 : i32, i32
  }
  func.func @transform_2(%arg0: i32, %arg1: i32) -> (i32, i32) {
    %c1_i32 = arith.constant 1 : i32
    %0 = arith.muli %arg0, %c1_i32 : i32
    %1 = arith.addi %0, %arg1 : i32
    %c0_i32 = arith.constant 0 : i32
    %c0_i32_0 = arith.constant 0 : i32
    return %c0_i32, %1 : i32, i32
  }
  func.func @transform_3(%arg0: i32, %arg1: i32) -> (i32, i32, i32, i32) {
    %c0_i32 = arith.constant 0 : i32
    %c0_i32_0 = arith.constant 0 : i32
    %c0_i32_1 = arith.constant 0 : i32
    %c0_i32_2 = arith.constant 0 : i32
    return %arg0, %c0_i32, %c0_i32_0, %c0_i32_1 : i32, i32, i32, i32
  }
}

</mosaic_0001>

<bundles_post_ra>
// kernel: tpu_custom_call.1
= control target key start
LH: loop header
LB: loop body
LE: loop exit
PB: predicated region body
PF: predicated region fallthrough
CT: control target
= control target key end

     0   :  { %8 = vsyncpa [#allocation3], 0  ;;  %s1779_s0 = inlined_call_operand.hbm [shape: f32[8,256], index: 0, kind: input, shape index: {}]   ;;  %s1780_s1 = inlined_call_operand.hbm [shape: f32[8,256], index: 1, kind: input, shape index: {}]   ;;  %s1781_s2 = inlined_call_operand.hbm [shape: f32[8,256], index: 2, kind: input, shape index: {}]   ;;  %s1782_s3 = inlined_call_operand.hbm [shape: f32[1,4,8,256], index: 3, kind: output, shape index: {}]  }
   0x1   :  { %9 = vsyncpa [#allocation6], 0 }
   0x2   :  { %10 = vsyncpa [#allocation4], 0  ;;  %s1070_s12 = smov [#allocation5]   ;;  %s1071_s14 = smov [#allocation2]  }
   0x3   :  { %s35_s13 = sshll.u32 %s1070_s12, 4  ;;  %s21_s15 = sshll.u32 %s1071_s14, 4  ;;  %s36_s13 = int_to_ptr.vmem [resolvable:$true] %s35_s13  ;;  %s22_s15 = int_to_ptr.vmem [resolvable:$true] %s21_s15 }
   0x4   :  { %s992_s16 = scalar_lea.vmem %s36_s13, 256  ;;  %p997_p1 = scmp.lt.s32.totalorder %s36_s13, %s36_s13 }
   0x5   :  { %p993_p0 = scmp.ne.s32.totalorder %s36_s13, %s992_s16  ;;  %p998_p2 = scmp.lt.s32.totalorder %s992_s16, %s992_s16 }
   0x7   :  { %p999_p3 = por %p998_p2, %p997_p1 }
   0x9   :  { %p1000_p4 = pnand %p999_p3, %p993_p0 }
   0xb   :  { %1003 = shalt.err (!%p1000_p4)
}
   0xc   :  { %38 = dma.hbm_to_vmem [thread:$0]  %s1780_s1, 256, %s36_s13, [#allocation6]  }
   0xd   :  { %s1012_s19 = scalar_lea.vmem %s22_s15, 256  ;;  %p1017_p6 = scmp.lt.s32.totalorder %s22_s15, %s22_s15 }
   0xe   :  { %p1013_p5 = scmp.ne.s32.totalorder %s22_s15, %s1012_s19  ;;  %p1018_p7 = scmp.lt.s32.totalorder %s1012_s19, %s1012_s19 }
  0x10   :  { %p1019_p8 = por %p1018_p7, %p1017_p6 }
  0x12   :  { %p1020_p9 = pnand %p1019_p8, %p1013_p5 }
  0x14   :  { %1023 = shalt.err (!%p1020_p9)
}
  0x15   :  { %24 = dma.hbm_to_vmem [thread:$0]  %s1779_s0, 256, %s22_s15, [#allocation3]  }
  0x16   :  { %s1072_s22 = smov [#allocation7]  }
  0x17   :  { %s49_s23 = sshll.u32 %s1072_s22, 4  ;;  %s50_s23 = int_to_ptr.vmem [resolvable:$true] %s49_s23 }
  0x18   :  { %s1032_s24 = scalar_lea.vmem %s50_s23, 256  ;;  %p1037_p11 = scmp.lt.s32.totalorder %s50_s23, %s50_s23 }
  0x19   :  { %p1033_p10 = scmp.ne.s32.totalorder %s50_s23, %s1032_s24  ;;  %p1038_p12 = scmp.lt.s32.totalorder %s1032_s24, %s1032_s24 }
  0x1b   :  { %p1039_p13 = por %p1038_p12, %p1037_p11 }
  0x1d   :  { %p1040_p0 = pnand %p1039_p13, %p1033_p10 }
  0x1f   :  { %1043 = shalt.err (!%p1040_p0)
}
  0x20   :  { %52 = dma.hbm_to_vmem [thread:$0]  %s1781_s2, 256, %s50_s23, [#allocation6]  }
  0x21   :  { %1064 = dma.done.wait [#allocation3], 256  }
  0x22   :  { %1065 = vsyncadd [#allocation3], 4294967040 }
  0x23   :  { %1066 = dma.done.wait [#allocation6], 512  }
  0x24   :  { %1067 = vsyncadd [#allocation6], 4294966784  ;;  %v81_v0 = vlaneseq  ;;  %v1073_v1 = vmov 1966171168   ;;  %v1106_v5 = vld [vmem:[#allocation2] sm:$0xff]  ;;  %v1108_v6 = vld [vmem:[#allocation2 + $0x8] sm:$0xff] }
  0x25   :  { %v79_v2 = vunpack.c.l.s4 %v1073_v1  ;;  %1805 = vst [vmem:[#allocation12_spill] sm:$0xff] %v1106_v5  ;;  %1806 = vst [vmem:[#allocation13_spill] sm:$0xff] %v1108_v6  ;;  %v76_v7 = vcombine.low %v1106_v5, %v1108_v6  ;;  %v1114_v9 = vld [vmem:[#allocation5] sm:$0xff]  ;;  %v1116_v10 = vld [vmem:[#allocation5 + $0x8] sm:$0xff]  ;;  %v77_v11 = vcombine.high %v1106_v5, %v1108_v6  ;;  %s1074_s0 = smov [#allocation8]  }
  0x26   :  { %v82_v4 = vshrl.u32 %v81_v0, 7  ;;  %1807 = vst [vmem:[#allocation14_spill] sm:$0xff] %v1116_v10  ;;  %v224_v13 = vcombine.low %v1114_v9, %v1116_v10  ;;  %v225_v14 = vcombine.high %v1114_v9, %v1116_v10  ;;  %v1126_v17 = vld [vmem:[#allocation7] sm:$0xff]  ;;  %v1128_v18 = vld [vmem:[#allocation7 + $0x8] sm:$0xff]  ;;  %s893_s2 = sshll.u32 %s1074_s0, 4  ;;  %s894_s2 = int_to_ptr.vmem [resolvable:$true] %s893_s2 }
  0x27   :  { %v80_v3 = vunpack.c.0.s8 %v79_v2  ;;  %1808 = vst [vmem:[#allocation15_spill] sm:$0xff] %v1126_v17  ;;  %1809 = vst [vmem:[#allocation16_spill] sm:$0xff] %v1128_v18  ;;  %v372_v26 = vcombine.low %v1126_v17, %v1128_v18  ;;  %v373_v27 = vcombine.high %v1126_v17, %v1128_v18  ;;  %s1044_s26 = scalar_lea.vmem %s894_s2, 1024  ;;  %p1049_p2 = scmp.lt.s32.totalorder %s894_s2, %s894_s2 }
  0x28   :  { %v1135_v23 = vsub.s32 0, %v82_v4  ;;  %v1167_v36 = vsub.s32 1, %v82_v4  ;;  %p1045_p1 = scmp.ne.s32.totalorder %s894_s2, %s1044_s26  ;;  %p1050_p3 = scmp.lt.s32.totalorder %s1044_s26, %s1044_s26 }
  0x29   :  { %v1112_v8 = vsub.s32 %v80_v3, %v82_v4 }
  0x2a   :  { %1810 = vst [vmem:[#allocation17_spill] sm:$0xff] %v1167_v36  ;;  %p1051_p4 = por %p1050_p3, %p1049_p2 }
  0x2b   :  { %v84_v12 = vrot.slane %v76_v7, %v1112_v8  ;;  %v91_v15 = vrot.slane %v77_v11, %v1112_v8  ;;  %v232_v19 = vrot.slane %v224_v13, %v1112_v8  ;;  %v239_v20 = vrot.slane %v225_v14, %v1112_v8 }
  0x2c   :  { %v380_v40 = vrot.slane %v372_v26, %v1112_v8  ;;  %v387_v41 = vrot.slane %v373_v27, %v1112_v8  ;;  %p1052_p5 = pnand %p1051_p4, %p1045_p1 }
  0x2d   :  { %v92_v16 = vcombine.high %v84_v12, %v84_v12  ;;  %v93_v21 = vcombine.high %v91_v15, %v91_v15  ;;  %v1133_v22 = vrot.slane %v84_v12, %v1112_v8  ;;  %v1138_v24 = vrot.slane %v91_v15, %v1112_v8 }
  0x2e   :  { %v240_v28 = vcombine.high %v232_v19, %v232_v19  ;;  %v241_v29 = vcombine.high %v239_v20, %v239_v20  ;;  %v1148_v30 = vrot.slane %v232_v19, %v1112_v8  ;;  %v1180_v42 = vrot.slane %v239_v20, %v1112_v8 }
  0x2f   :  { %v1141_v25 = vrot.slane %v92_v16, %v1112_v8  ;;  %v1151_v31 = vrot.slane %v93_v21, %v1112_v8  ;;  %v1155_v32 = vcombine.high %v1133_v22, %v1133_v22  ;;  %v1159_v33 = vcombine.high %v1138_v24, %v1138_v24 }
  0x30   :  { %v129_v34 = vrot.slane %v1133_v22, %v1135_v23  ;;  %v161_v37 = vrot.slane %v1138_v24, %v1135_v23  ;;  %v1183_v43 = vrot.slane %v240_v28, %v1112_v8  ;;  %v1186_v44 = vrot.slane %v241_v29, %v1112_v8 }
  0x31   :  { %v1165_v35 = vcombine.high %v1141_v25, %v1141_v25  ;;  %v1173_v38 = vcombine.high %v1151_v31, %v1151_v31  ;;  %v137_v39 = vrot.slane %v1141_v25, %v1135_v23  ;;  %v1190_v45 = vcombine.high %v1148_v30, %v1148_v30 }
  0x32   :  { %v145_v46 = vrot.slane %v1155_v32, %v1135_v23  ;;  %v169_v47 = vrot.slane %v1151_v31, %v1135_v23  ;;  %v177_v48 = vrot.slane %v1159_v33, %v1135_v23  ;;  %v1199_v49 = vsub.f32 %v1106_v5, %v129_v34 }
  0x33   :  { %v153_v50 = vrot.slane %v1165_v35, %v1135_v23  ;;  %v1204_v51 = vsub.f32 %v1106_v5, %v161_v37  ;;  %v1208_v52 = vcombine.high %v1180_v42, %v1180_v42  ;;  %v1212_v53 = vcombine.high %v1183_v43, %v1183_v43 }
  0x34   :  { %v185_v54 = vrot.slane %v1173_v38, %v1135_v23  ;;  %v1217_v55 = vsub.f32 %v1106_v5, %v137_v39  ;;  %v1221_v56 = vcombine.high %v1186_v44, %v1186_v44  ;;  %v277_v57 = vrot.slane %v1148_v30, %v1135_v23 }
  0x35   :  { %1811 = vst [vmem:[#allocation18_spill] sm:$0xff] %v1208_v52  ;;  %v285_v58 = vrot.slane %v1183_v43, %v1135_v23  ;;  %v293_v59 = vrot.slane %v1190_v45, %v1135_v23  ;;  %v388_v60 = vcombine.high %v380_v40, %v380_v40  ;;  %v1230_v61 = vrot.slane %v380_v40, %v1112_v8 }
  0x36   :  { %1812 = vst [vmem:[#allocation19_spill] sm:$0xff] %v1221_v56  ;;  %v1233_v62 = vsub.f32 %v1106_v5, %v145_v46  ;;  %v309_v63 = vrot.slane %v1180_v42, %v1135_v23  ;;  %v317_v0 = vrot.slane %v1186_v44, %v1135_v23  ;;  %v389_v1 = vcombine.high %v387_v41, %v387_v41 }
  0x37   :  { %1813 = vst [vmem:[#allocation20_spill] sm:$0xff] %v1230_v61  ;;  %v1240_v2 = vsub.f32 %v1106_v5, %v169_v47  ;;  %v1243_v3 = vsub.f32 %v1106_v5, %v177_v48  ;;  %v301_v4 = vrot.slane %v1212_v53, %v1135_v23  ;;  %v325_v7 = vrot.slane %v1208_v52, %v1135_v23 }
  0x38   :  { %v1250_v11 = vsub.f32 %v1106_v5, %v153_v50  ;;  %v333_v12 = vrot.slane %v1221_v56, %v1135_v23  ;;  %v1255_v13 = vsub.f32 %v1114_v9, %v277_v57  ;;  %v1258_v14 = vrot.slane %v387_v41, %v1112_v8 }
  0x39   :  { %v1261_v15 = vsub.f32 %v1114_v9, %v285_v58  ;;  %v1264_v16 = vsub.f32 %v1114_v9, %v293_v59  ;;  %v1267_v19 = vrot.slane %v388_v60, %v1112_v8  ;;  %v1271_v20 = vcombine.high %v1230_v61, %v1230_v61 }
  0x3a   :  { %1814 = vst [vmem:[#allocation21_spill] sm:$0xff] %v1258_v14  ;;  %v1274_v21 = vsub.f32 %v1106_v5, %v185_v54  ;;  %v1277_v26 = vsub.f32 %v1114_v9, %v309_v63  ;;  %v1280_v27 = vsub.f32 %v1114_v9, %v317_v0  ;;  %v1283_v28 = vrot.slane %v389_v1, %v1112_v8 }
  0x3b   :  { %1815 = vst [vmem:[#allocation22_spill] sm:$0xff] %v1267_v19  ;;  %1816 = vst [vmem:[#allocation23_spill] sm:$0xff] %v1271_v20  ;;  %v1286_v29 = vsub.f32 %v1114_v9, %v301_v4  ;;  %v1289_v34 = vsub.f32 %v1114_v9, %v325_v7  ;;  %v1293_v37 = vcombine.high %v1258_v14, %v1258_v14  ;;  %vm518_vm0 = vcmp.gt.f32.partialorder %v1255_v13, 0.0 }
  0x3c   :  { %1817 = vst [vmem:[#allocation24_spill] sm:$0xff] %v1283_v28  ;;  %v425_v39 = vrot.slane %v1230_v61, %v1135_v23  ;;  %v1298_v40 = vsub.f32 %v1114_v9, %v333_v12  ;;  %v1302_v8 = vcombine.high %v1267_v19, %v1267_v19  ;;  %v1306_v41 = vcombine.high %v1283_v28, %v1283_v28 }
  0x3d   :  { %1818 = vst [vmem:[#allocation25_spill] sm:$0xff] %v1293_v37  ;;  %v457_v46 = vrot.slane %v1258_v14, %v1135_v23  ;;  %v433_v47 = vrot.slane %v1267_v19, %v1135_v23  ;;  %v441_v48 = vrot.slane %v1271_v20, %v1135_v23  ;;  %vm520_vm1 = vcmp.gt.f32.partialorder %v1261_v15, 0.0 }
  0x3e   :  { %1819 = vst [vmem:[#allocation26_spill] sm:$0xff] %v1302_v8  ;;  %1820 = vst [vmem:[#allocation27_spill] sm:$0xff] %v1306_v41  ;;  %vm522_vm2 = vcmp.gt.f32.partialorder %v1264_v16, 0.0  ;;  %v566_v9 = vand.u32 2147483647, %v1199_v49  ;;  %v465_v54 = vrot.slane %v1283_v28, %v1135_v23  ;;  %vm526_vm3 = vcmp.gt.f32.partialorder %v1277_v26, 0.0 }
  0x3f   :  { %v568_v50 = vand.u32 2147483647, %v1217_v55  ;;  %vm528_vm4 = vcmp.gt.f32.partialorder %v1280_v27, 0.0  ;;  %v570_v57 = vand.u32 2147483647, %v1233_v62  ;;  %v473_v60 = vrot.slane %v1293_v37, %v1135_v23 }
  0x40   :  { %v572_v58 = vand.u32 2147483647, %v1250_v11  ;;  %v574_v59 = vand.u32 2147483647, %v1204_v51  ;;  %v502_v63 = vmul.f32 %v425_v39, %v1126_v17  ;;  %v576_v0 = vand.u32 2147483647, %v1240_v2 }
  0x41   :  { %v578_v1 = vand.u32 2147483647, %v1243_v3  ;;  %v582_v4 = vsub.f32 0.0, %v566_v9  ;;  %v584_v7 = vsub.f32 0.0, %v568_v50  ;;  %v586_v12 = vsub.f32 0.0, %v570_v57 }
  0x42   :  { %v588_v56 = vsub.f32 0.0, %v572_v58  ;;  %v449_v28 = vrot.slane %v1302_v8, %v1135_v23  ;;  %v580_v5 = vand.u32 2147483647, %v1274_v21  ;;  %v590_v18 = vsub.f32 0.0, %v574_v59 }
  0x43   :  { %v592_v14 = vsub.f32 0.0, %v576_v0  ;;  %v481_v37 = vrot.slane %v1306_v41, %v1135_v23  ;;  %v598_v20 = vmul.f32 1.442695, %v582_v4  ;;  %v602_v39 = vmul.f32 1.442695, %v584_v7 }
  0x44   :  { %v606_v19 = vmul.f32 1.442695, %v586_v12  ;;  %v504_v61 = vmul.f32 %v433_v47, %v1126_v17  ;;  %v510_v9 = vmul.f32 %v457_v46, %v1126_v17  ;;  %v594_v50 = vsub.f32 0.0, %v578_v1 }
  0x45   :  { %v610_v57 = vmul.f32 1.442695, %v588_v56  ;;  %v506_v58 = vmul.f32 %v441_v48, %v1126_v17  ;;  %v512_v8 = vmul.f32 %v465_v54, %v1126_v17  ;;  %920 = vpow2.f32 %v598_v20 }
  0x46   :  { %v614_v10 = vmul.f32 1.442695, %v590_v18  ;;  %v514_v59 = vmul.f32 %v473_v60, %v1126_v17  ;;  %vm530_vm5 = vcmp.gt.f32.partialorder %v1289_v34, 0.0  ;;  %v596_v23 = vsub.f32 0.0, %v580_v5 }
  0x47   :  { %922 = vpow2.f32 %v602_v39  ;;  %v508_v0 = vmul.f32 %v449_v28, %v1126_v17  ;;  %v516_v47 = vmul.f32 %v481_v37, %v1126_v17  ;;  %v618_v46 = vmul.f32 1.442695, %v592_v14 }
  0x48   :  { %924 = vpow2.f32 %v606_v19  ;;  %vm524_vm6 = vcmp.gt.f32.partialorder %v1286_v29, 0.0  ;;  %vm532_vm7 = vcmp.gt.f32.partialorder %v1298_v40, 0.0  ;;  %v622_v56 = vmul.f32 1.442695, %v594_v50 }
  0x49   :  { %926 = vpow2.f32 %v610_v57  ;;  %v1348_v18 = vsel %vm518_vm0, %v502_v63, 0.0  ;;  %v1352_v5 = vsel %vm520_vm1, %v504_v61, 0.0  ;;  %v1356_v20 = vsel %vm522_vm2, %v506_v58, 0.0 }
  0x4a   :  { %928 = vpow2.f32 %v614_v10  ;;  %v1360_v14 = vsel %vm526_vm3, %v510_v9, 0.0  ;;  %v1364_v19 = vsel %vm528_vm4, %v512_v8, 0.0  ;;  %v1368_v13 = vsel %vm530_vm5, %v514_v59, 0.0 }
  0x4b   :  { %v626_v15 = vmul.f32 1.442695, %v596_v23  ;;  %v1370_v61 = vsel %vm524_vm6, %v508_v0, 0.0  ;;  %v1372_v28 = vsel %vm532_vm7, %v516_v47, 0.0  ;;  %930 = vpow2.f32 %v618_v46  ;;  %v1821_v47 = vld [vmem:[#allocation14_spill] sm:$0xff] }
  0x4c   :  { %932 = vpow2.f32 %v622_v56  ;;  %v133_v27 = vrot.slane %v1133_v22, %v1167_v36  ;;  %v141_v29 = vrot.slane %v1141_v25, %v1167_v36  ;;  %v149_v34 = vrot.slane %v1155_v32, %v1167_v36 }
  0x4d   :  { %v157_v37 = vrot.slane %v1165_v35, %v1167_v36  ;;  %v165_v40 = vrot.slane %v1138_v24, %v1167_v36  ;;  %934 = vpow2.f32 %v626_v15  ;;  %v173_v8 = vrot.slane %v1151_v31, %v1167_v36  ;;  %v1822_v15 = vld [vmem:[#allocation20_spill] sm:$0xff] }
  0x4e   :  { %v181_v48 = vrot.slane %v1159_v33, %v1167_v36  ;;  %v189_v22 = vrot.slane %v1173_v38, %v1167_v36  ;;  %v1399_v60 = vsub.f32 %v1108_v6, %v133_v27  ;;  %v281_v31 = vrot.slane %v1148_v30, %v1167_v36  ;;  %v1829_v24 = vld [vmem:[#allocation16_spill] sm:$0xff] }
  0x4f   :  { %v289_v33 = vrot.slane %v1183_v43, %v1167_v36  ;;  %v1406_v38 = vsub.f32 %v1108_v6, %v141_v29  ;;  %v1409_v63 = vsub.f32 %v1108_v6, %v149_v34  ;;  %v1412_v1 = vsub.f32 %v1108_v6, %v157_v37  ;;  %v1823_v34 = vld [vmem:[#allocation22_spill] sm:$0xff] }
  0x50   :  { %v297_v4 = vrot.slane %v1190_v45, %v1167_v36  ;;  %v1419_v12 = vsub.f32 %v1108_v6, %v165_v40  ;;  %v1422_v30 = vsub.f32 %v1108_v6, %v173_v8  ;;  %v1425_v43 = vsub.f32 %v1108_v6, %v181_v48  ;;  %v1824_v40 = vld [vmem:[#allocation23_spill] sm:$0xff]  ;;  %v1825_v48 = vld [vmem:[#allocation26_spill] sm:$0xff] }
  0x51   :  { %v1428_v39 = vsub.f32 %v1108_v6, %v189_v22  ;;  %v305_v45 = vrot.slane %v1212_v53, %v1167_v36  ;;  %v313_v57 = vrot.slane %v1180_v42, %v1167_v36  ;;  %v321_v58 = vrot.slane %v1186_v44, %v1167_v36 }
  0x52   :  { %v1416_v7 = vpop.eup %920  ;;  %v1445_v46 = vsub.f32 %v1821_v47, %v281_v31  ;;  %v1448_v56 = vsub.f32 %v1821_v47, %v289_v33  ;;  %v1454_v44 = vsub.f32 %v1821_v47, %v297_v4  ;;  %v429_v27 = vrot.slane %v1822_v15, %v1167_v36 }
  0x53   :  { %v630_v50 = vadd.f32 1.0, %v1416_v7  ;;  %v437_v37 = vrot.slane %v1823_v34, %v1167_v36  ;;  %v445_v8 = vrot.slane %v1824_v40, %v1167_v36  ;;  %v453_v22 = vrot.slane %v1825_v48, %v1167_v36 }
  0x54   :  { %v1430_v9 = vpop.eup %922  ;;  %v1468_v33 = vsub.f32 %v1821_v47, %v305_v45  ;;  %v1471_v4 = vsub.f32 %v1821_v47, %v313_v57  ;;  %v636_v15 = vand.u32 2147483647, %v1416_v7  ;;  %v1476_v34 = vsub.f32 %v1821_v47, %v321_v58 }
  0x55   :  { %v1439_v59 = vpop.eup %924  ;;  %v648_v23 = vadd.f32 1.0, %v1430_v9  ;;  %936 = vlog2.f32 %v630_v50  ;;  %v651_v0 = vmul.f32 -0.5, %v1430_v9  ;;  %v1483_v57 = vmul.f32 %v429_v27, %v1829_v24 }
  0x56   :  { %v1450_v53 = vpop.eup %926  ;;  %v666_v42 = vadd.f32 1.0, %v1439_v59  ;;  %1826 = vst [vmem:[#allocation20_spill] sm:$0xff] %v1471_v4  ;;  %1827 = vst [vmem:[#allocation22_spill] sm:$0xff] %v1476_v34  ;;  %v669_v35 = vmul.f32 -0.5, %v1439_v59  ;;  %v1487_v54 = vmul.f32 %v437_v37, %v1829_v24  ;;  %v1490_v58 = vmul.f32 %v445_v8, %v1829_v24 }
  0x57   :  { %v1458_v29 = vpop.eup %928  ;;  %938 = vlog2.f32 %v648_v23  ;;  %v684_v31 = vadd.f32 1.0, %v1450_v53  ;;  %v633_v23 = vmul.f32 -0.5, %v1416_v7  ;;  %v1493_v32 = vmul.f32 %v453_v22, %v1829_v24 }
  0x58   :  { %940 = vlog2.f32 %v666_v42  ;;  %v931_v50 = vpop.eup %930  ;;  %v702_v45 = vadd.f32 1.0, %v1458_v29  ;;  %v687_v25 = vmul.f32 -0.5, %v1450_v53  ;;  %vm1499_vm8 = vcmp.lt.f32.partialorder %v636_v15, 0.0004427343 }
  0x59   :  { %v933_v42 = vpop.eup %932  ;;  %942 = vlog2.f32 %v684_v31  ;;  %1830 = vst [vmem:[#allocation23_spill] sm:$0xff] %v1493_v32  ;;  %v654_v31 = vand.u32 2147483647, %v1430_v9  ;;  %v720_v27 = vadd.f32 1.0, %v931_v50  ;;  %v634_v26 = vadd.f32 1.0, %v633_v23 }
  0x5a   :  { %v1495_v48 = vpop.eup %934  ;;  %944 = vlog2.f32 %v702_v45  ;;  %v705_v37 = vmul.f32 -0.5, %v1458_v29  ;;  %v738_v8 = vadd.f32 1.0, %v933_v42  ;;  %v652_v16 = vadd.f32 1.0, %v651_v0 }
  0x5b   :  { %v672_v22 = vand.u32 2147483647, %v1439_v59  ;;  %946 = vlog2.f32 %v720_v27  ;;  %v723_v34 = vmul.f32 -0.5, %v931_v50  ;;  %vm519_vm9 = vcmp.gt.f32.partialorder %v1445_v46, 0.0 }
  0x5c   :  { %v670_v41 = vadd.f32 1.0, %v669_v35  ;;  %948 = vlog2.f32 %v738_v8  ;;  %v741_v47 = vmul.f32 -0.5, %v933_v42  ;;  %v756_v45 = vadd.f32 1.0, %v1495_v48 }
  0x5d   :  { %vm1507_vm10 = vcmp.lt.f32.partialorder %v654_v31, 0.0004427343  ;;  %v688_v15 = vadd.f32 1.0, %v687_v25  ;;  %v690_v52 = vand.u32 2147483647, %v1450_v53  ;;  %vm521_vm11 = vcmp.gt.f32.partialorder %v1448_v56, 0.0 }
  0x5e   :  { %v706_v0 = vadd.f32 1.0, %v705_v37  ;;  %v708_v27 = vand.u32 2147483647, %v1458_v29  ;;  %v726_v4 = vand.u32 2147483647, %v931_v50  ;;  %950 = vlog2.f32 %v756_v45 }
  0x5f   :  { %v635_v35 = vmul.f32 %v1416_v7, %v634_v26  ;;  %v653_v8 = vmul.f32 %v1430_v9, %v652_v16  ;;  %v724_v32 = vadd.f32 1.0, %v723_v34  ;;  %v759_v31 = vmul.f32 -0.5, %v1495_v48 }
  0x60   :  { %v671_v24 = vmul.f32 %v1439_v59, %v670_v41  ;;  %vm1518_vm12 = vcmp.lt.f32.partialorder %v672_v22, 0.0004427343  ;;  %v742_v36 = vadd.f32 1.0, %v741_v47  ;;  %v744_v37 = vand.u32 2147483647, %v933_v42 }
  0x61   :  { %v689_v45 = vmul.f32 %v1450_v53, %v688_v15  ;;  %vm1523_vm13 = vcmp.lt.f32.partialorder %v690_v52, 0.0004427343  ;;  %v762_v16 = vand.u32 2147483647, %v1495_v48  ;;  %v707_v41 = vmul.f32 %v1458_v29, %v706_v0 }
  0x62   :  { %v937_v40 = vpop.eup %936  ;;  %vm1529_vm14 = vcmp.lt.f32.partialorder %v708_v27, 0.0004427343  ;;  %vm1533_vm15 = vcmp.lt.f32.partialorder %v726_v4, 0.0004427343  ;;  %v725_v34 = vmul.f32 %v931_v50, %v724_v32  ;;  %v743_v15 = vmul.f32 %v933_v42, %v742_v36 }
  0x63   :  { %v632_v6 = vmul.f32 0.6931472, %v937_v40  ;;  %v760_v40 = vadd.f32 1.0, %v759_v31  ;;  %vm1541_vm0 = vcmp.lt.f32.partialorder %v744_v37, 0.0004427343  ;;  %v1845_v4 = vmin.f32 %v1199_v49, 0.0 }
  0x64   :  { %v939_v17 = vpop.eup %938  ;;  %vm1549_vm1 = vcmp.lt.f32.partialorder %v762_v16, 0.0004427343  ;;  %v1848_v32 = vmin.f32 %v1217_v55, 0.0  ;;  %v1849_v36 = vmin.f32 %v1233_v62, 0.0  ;;  %v1561_v49 = vsel %vm519_vm9, %v1483_v57, 0.0 }
  0x65   :  { %v941_v7 = vpop.eup %940  ;;  %v650_v9 = vmul.f32 0.6931472, %v939_v17  ;;  %v638_v52 = vsel %vm1499_vm8, %v635_v35, %v632_v6  ;;  %v761_v31 = vmul.f32 %v1495_v48, %v760_v40  ;;  %v1850_v37 = vmin.f32 %v1250_v11, 0.0 }
  0x66   :  { %v668_v53 = vmul.f32 0.6931472, %v941_v7  ;;  %v943_v22 = vpop.eup %942  ;;  %v774_v0 = vsub.f32 %v1845_v4, %v638_v52  ;;  %vm523_vm2 = vcmp.gt.f32.partialorder %v1454_v44, 0.0  ;;  %v569_v48 = vand.u32 2147483647, %v1406_v38 }
  0x67   :  { %v656_v17 = vsel %vm1507_vm10, %v653_v8, %v650_v9  ;;  %v686_v10 = vmul.f32 0.6931472, %v943_v22  ;;  %v945_v23 = vpop.eup %944  ;;  %v1851_v52 = vmin.f32 %v1204_v51, 0.0  ;;  %vm525_vm3 = vcmp.gt.f32.partialorder %v1468_v33, 0.0 }
  0x68   :  { %v674_v27 = vsel %vm1518_vm12, %v671_v24, %v668_v53  ;;  %v776_v50 = vsub.f32 %v1848_v32, %v656_v17  ;;  %v790_v35 = vmul.f32 %v774_v0, %v1348_v18  ;;  %v1566_v24 = vsel %vm521_vm11, %v1487_v54, 0.0  ;;  %v947_v25 = vpop.eup %946 }
  0x69   :  { %v778_v42 = vsub.f32 %v1849_v36, %v674_v27  ;;  %v692_v55 = vsel %vm1523_vm13, %v689_v45, %v686_v10  ;;  %v704_v8 = vmul.f32 0.6931472, %v945_v23  ;;  %v567_v54 = vand.u32 2147483647, %v1399_v60  ;;  %v949_v56 = vpop.eup %948 }
  0x6a   :  { %v792_v62 = vmul.f32 %v776_v50, %v1352_v5  ;;  %v780_v16 = vsub.f32 %v1850_v37, %v692_v55  ;;  %v806_v57 = vmul.f32 %v790_v35, %v790_v35  ;;  %v722_v26 = vmul.f32 0.6931472, %v947_v25 }
  0x6b   :  { %v794_v46 = vmul.f32 %v778_v42, %v1356_v20  ;;  %v710_v45 = vsel %vm1529_vm14, %v707_v41, %v704_v8  ;;  %v740_v9 = vmul.f32 0.6931472, %v949_v56  ;;  %v951_v22 = vpop.eup %950  ;;  %v571_v0 = vand.u32 2147483647, %v1409_v63 }
  0x6c   :  { %v808_v7 = vmul.f32 %v792_v62, %v792_v62  ;;  %v782_v11 = vsub.f32 %v1851_v52, %v710_v45  ;;  %v796_v53 = vmul.f32 %v780_v16, %v1370_v61  ;;  %v728_v17 = vsel %vm1533_vm15, %v725_v34, %v722_v26 }
  0x6d   :  { %v810_v40 = vmul.f32 %v794_v46, %v794_v46  ;;  %v573_v41 = vand.u32 2147483647, %v1412_v1  ;;  %v746_v59 = vsel %vm1541_vm0, %v743_v15, %v740_v9  ;;  %v758_v27 = vmul.f32 0.6931472, %v951_v22 }
  0x6e   :  { %v822_v4 = vadd.f32 %v808_v7, %v806_v57  ;;  %v1852_v10 = vmin.f32 %v1240_v2, 0.0  ;;  %v798_v32 = vmul.f32 %v782_v11, %v1360_v14  ;;  %v1853_v50 = vmin.f32 %v1243_v3, 0.0 }
  0x6f   :  { %v812_v36 = vmul.f32 %v796_v53, %v796_v53  ;;  %v575_v34 = vand.u32 2147483647, %v1419_v12  ;;  %v764_v42 = vsel %vm1549_vm1, %v761_v31, %v758_v27  ;;  %v577_v15 = vand.u32 2147483647, %v1422_v30 }
  0x70   :  { %v784_v51 = vsub.f32 %v1852_v10, %v728_v17  ;;  %v786_v23 = vsub.f32 %v1853_v50, %v746_v59  ;;  %v823_v47 = vadd.f32 %v822_v4, %v810_v40  ;;  %v814_v29 = vmul.f32 %v798_v32, %v798_v32 }
  0x71   :  { %v1854_v2 = vmin.f32 %v1274_v21, 0.0  ;;  %v579_v3 = vand.u32 2147483647, %v1425_v43  ;;  %v581_v37 = vand.u32 2147483647, %v1428_v39  ;;  %v583_v6 = vsub.f32 0.0, %v567_v54 }
  0x72   :  { %v800_v35 = vmul.f32 %v784_v51, %v1364_v19  ;;  %v802_v8 = vmul.f32 %v786_v23, %v1368_v13  ;;  %v824_v62 = vadd.f32 %v823_v47, %v812_v36  ;;  %v585_v31 = vsub.f32 0.0, %v569_v48  ;;  %v1857_v36 = vld [vmem:[#allocation15_spill] sm:$0xff]  ;;  %v1858_v47 = vld [vmem:[#allocation17_spill] sm:$0xff] }
  0x73   :  { %v788_v55 = vsub.f32 %v1854_v2, %v764_v42  ;;  %v587_v56 = vsub.f32 0.0, %v571_v0  ;;  %v589_v45 = vsub.f32 0.0, %v573_v41  ;;  %v591_v21 = vsub.f32 0.0, %v575_v34  ;;  %886 = vst [vmem:[#allocation8 + $0x30] sm:$0xff] %v1857_v36  ;;  %v1859_v34 = vld [vmem:[#allocation24_spill] sm:$0xff]  ;;  %v1863_v2 = vld [vmem:[#allocation23_spill] sm:$0xff] }
  0x74   :  { %v816_v25 = vmul.f32 %v800_v35, %v800_v35  ;;  %v818_v46 = vmul.f32 %v802_v8, %v802_v8  ;;  %v825_v57 = vadd.f32 %v824_v62, %v814_v29  ;;  %v593_v26 = vsub.f32 0.0, %v577_v15  ;;  %v1860_v35 = vld [vmem:[#allocation16_spill] sm:$0xff]  ;;  %v1861_v29 = vld [vmem:[#allocation21_spill] sm:$0xff] }
  0x75   :  { %v804_v16 = vmul.f32 %v788_v55, %v1372_v28  ;;  %v595_v7 = vsub.f32 0.0, %v579_v3  ;;  %v1609_v11 = vsel %vm523_vm2, %v1490_v58, 0.0  ;;  %v600_v53 = vmul.f32 1.442695, %v583_v6  ;;  %v1855_v58 = vld [vmem:[#allocation12_spill] sm:$0xff]  ;;  %887 = vst [vmem:[#allocation8 + $0x38] sm:$0xff] %v1860_v35 }
  0x76   :  { %v826_v52 = vadd.f32 %v825_v57, %v816_v25  ;;  %v604_v40 = vmul.f32 1.442695, %v585_v31  ;;  %v608_v54 = vmul.f32 1.442695, %v587_v56  ;;  %v612_v48 = vmul.f32 1.442695, %v589_v45 }
  0x77   :  { %v820_v9 = vmul.f32 %v804_v16, %v804_v16  ;;  %v836_v22 = vadd.f32 %v1352_v5, %v1348_v18  ;;  %v597_v4 = vsub.f32 0.0, %v581_v37  ;;  %952 = vpow2.f32 %v600_v53  ;;  %v1856_v5 = vld [vmem:[#allocation13_spill] sm:$0xff]  ;;  %v1864_v8 = vld [vmem:[#allocation20_spill] sm:$0xff]  ;;  %v1865_v3 = vld [vmem:[#allocation19_spill] sm:$0xff] }
  0x78   :  { %v827_v17 = vadd.f32 %v826_v52, %v818_v46  ;;  %v616_v0 = vmul.f32 1.442695, %v591_v21  ;;  %954 = vpow2.f32 %v604_v40  ;;  %v620_v41 = vmul.f32 1.442695, %v593_v26  ;;  %v1866_v37 = vld [vmem:[#allocation18_spill] sm:$0xff]  ;;  %v1869_v46 = vld [vmem:[#allocation25_spill] sm:$0xff] }
  0x79   :  { %v624_v59 = vmul.f32 1.442695, %v595_v7  ;;  %v837_v27 = vadd.f32 %v836_v22, %v1356_v20  ;;  %956 = vpow2.f32 %v608_v54  ;;  %v843_v44 = vadd.f32 %v1566_v24, %v1561_v49  ;;  %v1868_v31 = vld [vmem:[#allocation14_spill] sm:$0xff]  ;;  %v1870_v45 = vld [vmem:[#allocation27_spill] sm:$0xff] }
  0x7a   :  { %v828_v10 = vadd.f32 %v827_v17, %v820_v9  ;;  %v850_v51 = vmul.f32 %v1855_v58, %v1855_v58  ;;  %958 = vpow2.f32 %v612_v48  ;;  %v851_v32 = vmul.f32 %v1856_v5, %v1856_v5  ;;  %v1871_v26 = vld [vmem:[#allocation22_spill] sm:$0xff] }
  0x7b   :  { %v838_v18 = vadd.f32 %v837_v27, %v1370_v61  ;;  %960 = vpow2.f32 %v616_v0  ;;  %v844_v50 = vadd.f32 %v843_v44, %v1609_v11  ;;  %v628_v23 = vmul.f32 1.442695, %v597_v4 }
  0x7c   :  { %880 = vst [vmem:[#allocation8] sm:$0xff] %v828_v10  ;;  %v469_v42 = vrot.slane %v1859_v34, %v1858_v47  ;;  %v1862_v15 = vrot.slane %v1861_v29, %v1858_v47  ;;  %v1633_v55 = vsel %vm525_vm3, %v1863_v2, 0.0  ;;  %962 = vpow2.f32 %v620_v41  ;;  %884 = vst [vmem:[#allocation8 + $0x20] sm:$0xff] %v850_v51 }
  0x7d   :  { %v839_v20 = vadd.f32 %v838_v18, %v1360_v14  ;;  %vm527_vm4 = vcmp.gt.f32.partialorder %v1864_v8, 0.0  ;;  %964 = vpow2.f32 %v624_v59  ;;  %v845_v62 = vadd.f32 %v844_v50, %v1633_v55  ;;  %885 = vst [vmem:[#allocation8 + $0x28] sm:$0xff] %v851_v32 }
  0x7e   :  { %v511_v61 = vmul.f32 %v1862_v15, %v1860_v35  ;;  %v337_v25 = vrot.slane %v1865_v3, %v1858_v47  ;;  %966 = vpow2.f32 %v628_v23  ;;  %v1867_v6 = vrot.slane %v1866_v37, %v1858_v47 }
  0x7f   :  { %v840_v14 = vadd.f32 %v839_v20, %v1364_v19  ;;  %v477_v57 = vrot.slane %v1869_v46, %v1858_v47  ;;  %v513_v19 = vmul.f32 %v469_v42, %v1860_v35  ;;  %v485_v21 = vrot.slane %v1870_v45, %v1858_v47 }
  0x80   :  { %v367_v16 = vsub.f32 %v1868_v31, %v1867_v6  ;;  %v1649_v56 = vsel %vm527_vm4, %v511_v61, 0.0  ;;  %vm529_vm5 = vcmp.gt.f32.partialorder %v1871_v26, 0.0  ;;  %v369_v9 = vsub.f32 %v1868_v31, %v337_v25 }
  0x81   :  { %v841_v33 = vadd.f32 %v840_v14, %v1368_v13  ;;  %v846_v13 = vadd.f32 %v845_v62, %v1649_v56  ;;  %v515_v40 = vmul.f32 %v477_v57, %v1860_v35  ;;  %v1658_v54 = vsel %vm529_vm5, %v513_v19, 0.0 }
  0x82   :  { %v517_v17 = vmul.f32 %v485_v21, %v1860_v35  ;;  %vm531_vm6 = vcmp.gt.f32.partialorder %v367_v16, 0.0  ;;  %vm533_vm7 = vcmp.gt.f32.partialorder %v369_v9, 0.0  ;;  %v551_v51 = vmin.f32 %v1399_v60, 0.0 }
  0x83   :  { %v842_v7 = vadd.f32 %v841_v33, %v1372_v28  ;;  %v847_v28 = vadd.f32 %v846_v13, %v1658_v54  ;;  %v1669_v27 = vsel %vm531_vm6, %v515_v40, 0.0  ;;  %v553_v32 = vmin.f32 %v1406_v38, 0.0 }
  0x84   :  { %v953_v52 = vpop.eup %952  ;;  %v1674_v58 = vsel %vm533_vm7, %v517_v17, 0.0  ;;  %v555_v20 = vmin.f32 %v1409_v63, 0.0  ;;  %v557_v36 = vmin.f32 %v1412_v1, 0.0  ;;  %v559_v47 = vmin.f32 %v1419_v12, 0.0 }
  0x85   :  { %v955_v53 = vpop.eup %954  ;;  %v639_v48 = vadd.f32 1.0, %v953_v52  ;;  %882 = vst [vmem:[#allocation8 + $0x10] sm:$0xff] %v842_v7  ;;  %v848_v18 = vadd.f32 %v847_v28, %v1669_v27  ;;  %v642_v50 = vmul.f32 -0.5, %v953_v52  ;;  %v561_v61 = vmin.f32 %v1422_v30, 0.0 }
  0x86   :  { %v1660_v22 = vpop.eup %956  ;;  %v657_v4 = vadd.f32 1.0, %v955_v53  ;;  %v660_v34 = vmul.f32 -0.5, %v955_v53  ;;  %v645_v2 = vand.u32 2147483647, %v953_v52  ;;  %v663_v3 = vand.u32 2147483647, %v955_v53 }
  0x87   :  { %v1664_v0 = vpop.eup %958  ;;  %968 = vlog2.f32 %v639_v48  ;;  %v675_v41 = vadd.f32 1.0, %v1660_v22  ;;  %v678_v35 = vmul.f32 -0.5, %v1660_v22  ;;  %v849_v14 = vadd.f32 %v848_v18, %v1674_v58 }
  0x88   :  { %v1667_v59 = vpop.eup %960  ;;  %970 = vlog2.f32 %v657_v4  ;;  %v693_v10 = vadd.f32 1.0, %v1664_v0  ;;  %v696_v29 = vmul.f32 -0.5, %v1664_v0  ;;  %v643_v62 = vadd.f32 1.0, %v642_v50 }
  0x89   :  { %972 = vlog2.f32 %v675_v41  ;;  %v1672_v44 = vpop.eup %962  ;;  %v711_v23 = vadd.f32 1.0, %v1667_v59  ;;  %v714_v25 = vmul.f32 -0.5, %v1667_v59  ;;  %v661_v33 = vadd.f32 1.0, %v660_v34  ;;  %883 = vst [vmem:[#allocation8 + $0x18] sm:$0xff] %v849_v14 }
  0x8a   :  { %v1678_v5 = vpop.eup %964  ;;  %974 = vlog2.f32 %v693_v10  ;;  %v729_v15 = vadd.f32 1.0, %v1672_v44  ;;  %v681_v37 = vand.u32 2147483647, %v1660_v22  ;;  %v563_v31 = vmin.f32 %v1425_v43, 0.0 }
  0x8b   :  { %v1685_v42 = vpop.eup %966  ;;  %976 = vlog2.f32 %v711_v23  ;;  %v747_v8 = vadd.f32 1.0, %v1678_v5  ;;  %v679_v16 = vadd.f32 1.0, %v678_v35  ;;  %v697_v46 = vadd.f32 1.0, %v696_v29 }
  0x8c   :  { %978 = vlog2.f32 %v729_v15  ;;  %v765_v6 = vadd.f32 1.0, %v1685_v42  ;;  %v699_v57 = vand.u32 2147483647, %v1664_v0  ;;  %v717_v19 = vand.u32 2147483647, %v1667_v59 }
  0x8d   :  { %980 = vlog2.f32 %v747_v8  ;;  %v732_v45 = vmul.f32 -0.5, %v1672_v44  ;;  %v644_v21 = vmul.f32 %v953_v52, %v643_v62  ;;  %vm1700_vm8 = vcmp.lt.f32.partialorder %v645_v2, 0.0004427343 }
  0x8e   :  { %982 = vlog2.f32 %v765_v6  ;;  %vm1704_vm9 = vcmp.lt.f32.partialorder %v663_v3, 0.0004427343  ;;  %v715_v13 = vadd.f32 1.0, %v714_v25  ;;  %v662_v40 = vmul.f32 %v955_v53, %v661_v33 }
  0x8f   :  { %vm1708_vm10 = vcmp.lt.f32.partialorder %v681_v37, 0.0004427343  ;;  %v735_v17 = vand.u32 2147483647, %v1672_v44  ;;  %v750_v4 = vmul.f32 -0.5, %v1678_v5  ;;  %v680_v41 = vmul.f32 %v1660_v22, %v679_v16 }
  0x90   :  { %vm1715_vm11 = vcmp.lt.f32.partialorder %v699_v57, 0.0004427343  ;;  %v768_v18 = vmul.f32 -0.5, %v1685_v42  ;;  %v698_v23 = vmul.f32 %v1664_v0, %v697_v46  ;;  %vm1721_vm12 = vcmp.lt.f32.partialorder %v717_v19, 0.0004427343 }
  0x91   :  { %v733_v35 = vadd.f32 1.0, %v732_v45  ;;  %v716_v22 = vmul.f32 %v1667_v59, %v715_v13  ;;  %v753_v2 = vand.u32 2147483647, %v1678_v5  ;;  %vm1731_vm13 = vcmp.lt.f32.partialorder %v735_v17, 0.0004427343 }
  0x92   :  { %v751_v0 = vadd.f32 1.0, %v750_v4  ;;  %v769_v37 = vadd.f32 1.0, %v768_v18  ;;  %v771_v46 = vand.u32 2147483647, %v1685_v42 }
  0x93   :  { %v734_v16 = vmul.f32 %v1672_v44, %v733_v35  ;;  %vm1748_vm14 = vcmp.lt.f32.partialorder %v753_v2, 0.0004427343 }
  0x94   :  { %v969_v9 = vpop.eup %968  ;;  %v752_v44 = vmul.f32 %v1678_v5, %v751_v0  ;;  %v770_v13 = vmul.f32 %v1685_v42, %v769_v37  ;;  %vm772_vm15 = vcmp.lt.f32.partialorder %v771_v46, 0.0004427343 }
  0x95   :  { %v971_v52 = vpop.eup %970  ;;  %v641_v28 = vmul.f32 0.6931472, %v969_v9 }
  0x96   :  { %v973_v53 = vpop.eup %972  ;;  %v659_v50 = vmul.f32 0.6931472, %v971_v52 }
  0x97   :  { %v647_v29 = vsel %vm1700_vm8, %v644_v21, %v641_v28  ;;  %v677_v15 = vmul.f32 0.6931472, %v973_v53  ;;  %v975_v8 = vpop.eup %974 }
  0x98   :  { %v665_v14 = vsel %vm1704_vm9, %v662_v40, %v659_v50  ;;  %v775_v3 = vsub.f32 %v551_v51, %v647_v29  ;;  %v695_v33 = vmul.f32 0.6931472, %v975_v8  ;;  %v977_v6 = vpop.eup %976 }
  0x99   :  { %v683_v25 = vsel %vm1708_vm10, %v680_v41, %v677_v15  ;;  %v777_v59 = vsub.f32 %v553_v32, %v665_v14  ;;  %v713_v51 = vmul.f32 0.6931472, %v977_v6  ;;  %v979_v32 = vpop.eup %978 }
  0x9a   :  { %v779_v57 = vsub.f32 %v555_v20, %v683_v25  ;;  %v791_v19 = vmul.f32 %v775_v3, %v1561_v49  ;;  %v701_v60 = vsel %vm1715_vm11, %v698_v23, %v695_v33  ;;  %v981_v49 = vpop.eup %980  ;;  %v731_v7 = vmul.f32 0.6931472, %v979_v32 }
  0x9b   :  { %v793_v38 = vmul.f32 %v777_v59, %v1566_v24  ;;  %v781_v21 = vsub.f32 %v557_v36, %v701_v60  ;;  %v719_v26 = vsel %vm1721_vm12, %v716_v22, %v713_v51  ;;  %v749_v40 = vmul.f32 0.6931472, %v981_v49  ;;  %v983_v1 = vpop.eup %982 }
  0x9c   :  { %v795_v63 = vmul.f32 %v779_v57, %v1609_v11  ;;  %v807_v20 = vmul.f32 %v791_v19, %v791_v19  ;;  %v783_v24 = vsub.f32 %v559_v47, %v719_v26  ;;  %v565_v36 = vmin.f32 %v1428_v39, 0.0 }
  0x9d   :  { %v809_v9 = vmul.f32 %v793_v38, %v793_v38  ;;  %v797_v5 = vmul.f32 %v781_v21, %v1633_v55  ;;  %v737_v11 = vsel %vm1731_vm13, %v734_v16, %v731_v7  ;;  %v755_v4 = vsel %vm1748_vm14, %v752_v44, %v749_v40 }
  0x9e   :  { %v811_v48 = vmul.f32 %v795_v63, %v795_v63  ;;  %v767_v42 = vmul.f32 0.6931472, %v983_v1  ;;  %v785_v52 = vsub.f32 %v561_v61, %v737_v11  ;;  %v799_v12 = vmul.f32 %v783_v24, %v1649_v56 }
  0x9f   :  { %v829_v17 = vadd.f32 %v809_v9, %v807_v20  ;;  %v787_v55 = vsub.f32 %v563_v31, %v755_v4  ;;  %v813_v47 = vmul.f32 %v797_v5, %v797_v5 }
  0xa0   :  { %v773_v39 = vsel %vm772_vm15, %v770_v13, %v767_v42  ;;  %v801_v41 = vmul.f32 %v785_v52, %v1658_v54  ;;  %v815_v10 = vmul.f32 %v799_v12, %v799_v12 }
  0xa1   :  { %v830_v28 = vadd.f32 %v829_v17, %v811_v48  ;;  %v789_v18 = vsub.f32 %v565_v36, %v773_v39  ;;  %v803_v53 = vmul.f32 %v787_v55, %v1669_v27 }
  0xa2   :  { %v817_v23 = vmul.f32 %v801_v41, %v801_v41 }
  0xa3   :  { %v831_v50 = vadd.f32 %v830_v28, %v813_v47  ;;  %v805_v34 = vmul.f32 %v789_v18, %v1674_v58  ;;  %v819_v30 = vmul.f32 %v803_v53, %v803_v53 }
  0xa5   :  { %v832_v61 = vadd.f32 %v831_v50, %v815_v10  ;;  %v821_v35 = vmul.f32 %v805_v34, %v805_v34 }
  0xa7   :  { %v833_v56 = vadd.f32 %v832_v61, %v817_v23 }
  0xa9   :  { %v834_v29 = vadd.f32 %v833_v56, %v819_v30 }
  0xab   :  { %v835_v43 = vadd.f32 %v834_v29, %v821_v35 }
  0xad   :  { %881 = vst [vmem:[#allocation8 + $0x8] sm:$0xff] %v835_v43 }
  0xae   :  { %1055 = shalt.err (!%p1052_p5)
}
  0xaf   :  { %s1075_s27 = smov 256   ;;  %s1076_s28 = smov 16  }
  0xb0   :  { %899 = dma.vmem_to_hbm [thread:$0]  %s894_s2, 1024, %s1782_s3, [#allocation4], %s1075_s27, %s1075_s27, %s1076_s28  }
  0xb1   :  { %1068 = dma.done.wait [#allocation4], 1024  }
  0xb2   :  { %1069 = vsyncadd [#allocation4], 4294966272 }
  0xb3   :  { %903 = vsyncpa [#allocation3], 1 }
  0xb4   :  { %904 = vsyncpa [#allocation6], 1 }
  0xb5   :  { %905 = vsyncpa [#allocation4], 1 }

</bundles_post_ra>
